<compile_context>
chip_gen: v5e
topology: v5e:2x2
jax: 0.10.0
libtpu: 0.0.40
codegen_flags: <defaults>
</compile_context>

<pallas_src>
import functools
import math

import jax
import jax.numpy as jnp
from jax.experimental import pallas as pl
from jax.experimental.pallas import tpu as pltpu

LN_EPS = 1e-5


# --------------------------- kernel ---------------------------------------

def _fc_layer_kernel(*refs, with_ln, non_linear, use_softplus, n_valid, n_pad):
    """Fused Linear (+ LayerNorm) (+ ReLU/Softplus) on one (tm, K) row-tile."""
    if with_ln:
        x_ref, w_ref, b_ref, g_ref, be_ref, o_ref = refs
    else:
        x_ref, w_ref, b_ref, o_ref = refs
        g_ref = be_ref = None

    w = w_ref[...]                                   # (K, N_pad), f32 or bf16
    if w.dtype == jnp.bfloat16:
        x = x_ref[...].astype(jnp.bfloat16)          # narrow dot operands only
    else:
        x = x_ref[...].astype(jnp.float32)
        w = w.astype(jnp.float32)

    # MXU matmul with f32 accumulation; bias add in f32.
    h = jnp.dot(x, w, preferred_element_type=jnp.float32)
    h = h + b_ref[...].astype(jnp.float32)

    if with_ln:
        inv_n = 1.0 / float(n_valid)
        if n_valid != n_pad:
            # LayerNorm statistics over the REAL features only (padding lanes
            # hold zeros from the zero-padded weights/bias).
            lane = jax.lax.broadcasted_iota(jnp.int32, h.shape, 1)
            maskf = (lane < n_valid).astype(jnp.float32)
            mu = jnp.sum(h * maskf, axis=-1, keepdims=True) * inv_n
            d = h - mu
            var = jnp.sum(d * d * maskf, axis=-1, keepdims=True) * inv_n
        else:
            mu = jnp.mean(h, axis=-1, keepdims=True)
            d = h - mu
            var = jnp.mean(d * d, axis=-1, keepdims=True)
        h = d * jax.lax.rsqrt(var + LN_EPS)
        h = h * g_ref[...].astype(jnp.float32) + be_ref[...].astype(jnp.float32)

    if non_linear:
        if use_softplus:
            # nn.Softplus(beta=100): (1/beta)*log1p(exp(beta*x)); linear above
            # threshold 20.  Clamp the exp argument so the unselected branch
            # never produces inf (safe if a VJP is ever added).
            bx = 100.0 * h
            sp = jnp.log1p(jnp.exp(jnp.minimum(bx, 20.0))) * (1.0 / 100.0)
            h = jnp.where(bx > 20.0, h, sp)
        else:
            h = jnp.maximum(h, 0.0)

    o_ref[...] = h.astype(o_ref.dtype)


# --------------------------- tiling helpers --------------------------------

def _round_up(x, m):
    return ((x + m - 1) // m) * m


def _choose_row_tile(m_pad8, k, n_pad, row_tile, w_bytes, budget_bytes=20 << 20):
    """Largest tm <= row_tile (multiple of 8) whose VMEM footprint fits budget."""
    tm = max(8, min(row_tile, m_pad8))
    tm = (tm // 8) * 8
    # resident (double-buffered by the pipeline) weight/bias/gamma/beta tiles
    resident = 2 * (k * n_pad * w_bytes + 3 * n_pad * 4)

    def est(t):
        return 2 * t * k * 4 + 2 * t * n_pad * 4 + resident

    while tm > 8 and est(tm) > budget_bytes:
        tm = max(8, ((tm // 2) // 8) * 8)
    return tm, est(tm)


# --------------------------- parameters ------------------------------------

def init_fclayer_params(key, in_dim, out_dim, *, with_ln=True, use_softplus=False,
                        non_linear=True, weight_dtype=jnp.float32):
    """Deterministic params mirroring FCLayer.__init__ (nn.Linear default init).

    Weights are stored pre-transposed (in_dim, out_dim_padded) with out_dim
    padded to a multiple of 128 for lane-dense stores; bias/gamma/beta are
    stored as (1, out_dim_padded).
    """
    kw, kb = jax.random.split(key)
    bound = 1.0 / math.sqrt(in_dim)
    w = jax.random.uniform(kw, (out_dim, in_dim), minval=-bound, maxval=bound,
                           dtype=jnp.float32)
    b = jax.random.uniform(kb, (out_dim,), minval=-bound, maxval=bound,
                           dtype=jnp.float32)

    n_pad = _round_up(max(out_dim, 128), 128)
    w_t = jnp.zeros((in_dim, n_pad), jnp.float32).at[:, :out_dim].set(w.T)
    w_t = w_t.astype(weight_dtype)
    b2 = jnp.zeros((1, n_pad), jnp.float32).at[:, :out_dim].set(b)
    gamma = jnp.zeros((1, n_pad), jnp.float32).at[:, :out_dim].set(1.0)
    beta = jnp.zeros((1, n_pad), jnp.float32)

    return {
        "w_t": w_t, "b": b2, "gamma": gamma, "beta": beta,
        "in_dim": in_dim, "out_dim": out_dim,
        "with_ln": bool(with_ln), "use_softplus": bool(use_softplus),
        "non_linear": bool(non_linear),
    }


# --------------------------- forward ---------------------------------------

def fclayer_forward(params, x, *, row_tile=512):
    """x: (..., in_dim) -> (..., out_dim), float32."""
    lead = x.shape[:-1]
    k = params["in_dim"]
    n = params["out_dim"]
    n_pad = params["w_t"].shape[1]
    w_bytes = jnp.dtype(params["w_t"].dtype).itemsize

    h = x.reshape(-1, k).astype(jnp.float32)
    m = h.shape[0]

    m_pad8 = max(8, _round_up(m, 8))
    tm, vmem_est = _choose_row_tile(m_pad8, k, n_pad, row_tile, w_bytes)
    m_pad = _round_up(m_pad8, tm)
    if m_pad != m:
        h = jnp.pad(h, ((0, m_pad - m), (0, 0)))
    grid = (m_pad // tm,)

    in_specs = [
        pl.BlockSpec((tm, k), lambda i: (i, 0)),       # x row-tile
        pl.BlockSpec((k, n_pad), lambda i: (0, 0)),    # weights: VMEM-resident
        pl.BlockSpec((1, n_pad), lambda i: (0, 0)),    # bias
    ]
    args = [h, params["w_t"], params["b"]]
    if params["with_ln"]:
        in_specs += [pl.BlockSpec((1, n_pad), lambda i: (0, 0)),
                     pl.BlockSpec((1, n_pad), lambda i: (0, 0))]
        args += [params["gamma"], params["beta"]]

    kernel = functools.partial(
        _fc_layer_kernel,
        with_ln=params["with_ln"], non_linear=params["non_linear"],
        use_softplus=params["use_softplus"], n_valid=n, n_pad=n_pad)

    vmem_limit = int(min(max(2 * vmem_est + (2 << 20), 16 << 20), 48 << 20))

    out = pl.pallas_call(
        kernel,
        out_shape=jax.ShapeDtypeStruct((m_pad, n_pad), jnp.float32),
        grid_spec=pltpu.PrefetchScalarGridSpec(
            num_scalar_prefetch=0,
            grid=grid,
            in_specs=in_specs,
            out_specs=pl.BlockSpec((tm, n_pad), lambda i: (i, 0)),
        ),
        compiler_params=pltpu.CompilerParams(
            dimension_semantics=("parallel",),
            vmem_limit_bytes=vmem_limit),
    )(*args)

    out = out[:m, :n]
    return out.reshape(*lead, n)


# --------------------------- pure-JAX reference -----------------------------

def _reference_forward(params, x):
    n = params["out_dim"]
    w = params["w_t"][:, :n].astype(jnp.float32)
    b = params["b"][0, :n]
    g = params["gamma"][0, :n]
    be = params["beta"][0, :n]

    lead = x.shape[:-1]
    h = x.reshape(-1, x.shape[-1]).astype(jnp.float32)
    h = h @ w + b
    if params["with_ln"]:
        mu = jnp.mean(h, axis=-1, keepdims=True)
        var = jnp.mean((h - mu) ** 2, axis=-1, keepdims=True)
        h = (h - mu) / jnp.sqrt(var + LN_EPS)
        h = h * g + be
    if params["non_linear"]:
        if params["use_softplus"]:
            bx = 100.0 * h
            h = jnp.where(bx > 20.0, h, jnp.log1p(jnp.exp(jnp.minimum(bx, 20.0))) / 100.0)
        else:
            h = jnp.maximum(h, 0.0)
    return h.reshape(*lead, n)


# --------------------------- test ------------------------------------------

if __name__ == "__main__":
    key = jax.random.PRNGKey(0)
    k_p, k_x, k_x2 = jax.random.split(key, 3)

    in_dim, out_dim = 16, 32
    x = jax.random.normal(k_x, (2, 8, in_dim), dtype=jnp.float32)

    configs = [
        # (with_ln, non_linear, use_softplus, weight_dtype, atol/rtol)
        (True,  True,  False, jnp.float32,  1e-4),   # Linear + LN + ReLU
        (True,  True,  True,  jnp.float32,  1e-4),   # Linear + LN + Softplus(100)
        (False, False, False, jnp.float32,  1e-4),   # plain Linear
        (True,  True,  False, jnp.bfloat16, 5e-2),   # bf16 dot operands (v6e/v7x path)
    ]

    for with_ln, non_linear, use_softplus, wdt, tol in configs:
        params = init_fclayer_params(
            k_p, in_dim, out_dim, with_ln=with_ln, use_softplus=use_softplus,
            non_linear=non_linear, weight_dtype=wdt)
        out = jax.block_until_ready(fclayer_forward(params, x))
        ref = _reference_forward(params, x)
        assert out.shape == (2, 8, out_dim)
        assert jnp.allclose(out, ref, atol=tol, rtol=tol), \
            f"mismatch (with_ln={with_ln}, softplus={use_softplus}, dtype={wdt})"

    # Larger, ragged M (not a multiple of the row tile) to exercise the
    # cdiv/padded grid path with a multi-step parallel grid.
    params = init_fclayer_params(k_p, in_dim, out_dim, with_ln=True)
    x_large = jax.random.normal(k_x2, (1000, in_dim), dtype=jnp.float32)
    out_l = jax.block_until_ready(fclayer_forward(params, x_large, row_tile=256))
    ref_l = _reference_forward(params, x_large)
    assert out_l.shape == (1000, out_dim)
    assert jnp.allclose(out_l, ref_l, atol=1e-4, rtol=1e-4), "mismatch (large M)"

    print("KERNEL_OK")
</pallas_src>

<mosaic_0001>
module attributes {stable_mosaic.version = 11 : i64} {
  func.func @_fc_layer_kernel(%arg0: i32, %arg1: memref<16x16xf32, #tpu.memory_space<vmem>>, %arg2: memref<16x128xf32, #tpu.memory_space<vmem>>, %arg3: memref<1x128xf32, #tpu.memory_space<vmem>>, %arg4: memref<1x128xf32, #tpu.memory_space<vmem>>, %arg5: memref<1x128xf32, #tpu.memory_space<vmem>>, %arg6: memref<16x128xf32, #tpu.memory_space<vmem>>) attributes {dimension_semantics = [#tpu.dimension_semantics<parallel>], iteration_bounds = array<i64: 1>, scalar_prefetch = 0 : i64, scratch_operands = 0 : i64, tpu.core_type = #tpu.core_type<tc>, window_params = [{transform_indices = @transform_0, window_bounds = array<i64: 16, 16>}, {pipeline_mode = #tpu.pipeline_mode<synchronous>, transform_indices = @transform_1, window_bounds = array<i64: 16, 128>}, {pipeline_mode = #tpu.pipeline_mode<synchronous>, transform_indices = @transform_2, window_bounds = array<i64: 1, 128>}, {pipeline_mode = #tpu.pipeline_mode<synchronous>, transform_indices = @transform_3, window_bounds = array<i64: 1, 128>}, {pipeline_mode = #tpu.pipeline_mode<synchronous>, transform_indices = @transform_4, window_bounds = array<i64: 1, 128>}, {transform_indices = @transform_5, window_bounds = array<i64: 16, 128>}]} {
    %c0 = arith.constant 0 : index
    %c0_0 = arith.constant 0 : index
    %0 = vector.load %arg2[%c0, %c0_0] : memref<16x128xf32, #tpu.memory_space<vmem>>, vector<16x128xf32>
    %c0_1 = arith.constant 0 : index
    %c0_2 = arith.constant 0 : index
    %1 = vector.load %arg1[%c0_1, %c0_2] : memref<16x16xf32, #tpu.memory_space<vmem>>, vector<16x16xf32>
    %cst = arith.constant dense<0.000000e+00> : vector<16x128xf32>
    %2 = tpu.matmul %1, %0, %cst {dimension_numbers = #tpu.dot_dimension_numbers<[1], [0], [0], [1], [0, 0, 1, 1], [], []>} : vector<16x16xf32>, vector<16x128xf32>, vector<16x128xf32> -> vector<16x128xf32>
    %c0_3 = arith.constant 0 : index
    %c0_4 = arith.constant 0 : index
    %3 = vector.load %arg3[%c0_3, %c0_4] : memref<1x128xf32, #tpu.memory_space<vmem>>, vector<1x128xf32>
    %4 = vector.broadcast %3 : vector<1x128xf32> to vector<16x128xf32>
    %5 = arith.addf %2, %4 : vector<16x128xf32>
    %6 = tpu.iota {dimensions = array<i32: 1>} : vector<16x128xi32>
    %c32_i32 = arith.constant 32 : i32
    %7 = vector.broadcast %c32_i32 : i32 to vector<16x128xi32>
    %8 = arith.cmpi slt, %6, %7 : vector<16x128xi32>
    %9 = arith.extui %8 : vector<16x128xi1> to vector<16x128xi32>
    %10 = arith.sitofp %9 : vector<16x128xi32> to vector<16x128xf32>
    %11 = arith.mulf %5, %10 : vector<16x128xf32>
    %cst_5 = arith.constant dense<0.000000e+00> : vector<16xf32>
    %12 = vector.multi_reduction <add>, %11, %cst_5 [1] : vector<16x128xf32> to vector<16xf32>
    %13 = vector.shape_cast %12 : vector<16xf32> to vector<16x1xf32>
    %cst_6 = arith.constant 3.125000e-02 : f32
    %14 = vector.broadcast %cst_6 : f32 to vector<16x1xf32>
    %15 = arith.mulf %13, %14 : vector<16x1xf32>
    %16 = vector.broadcast %15 : vector<16x1xf32> to vector<16x128xf32>
    %17 = arith.subf %5, %16 : vector<16x128xf32>
    %18 = arith.mulf %17, %17 : vector<16x128xf32>
    %19 = arith.mulf %18, %10 : vector<16x128xf32>
    %cst_7 = arith.constant dense<0.000000e+00> : vector<16xf32>
    %20 = vector.multi_reduction <add>, %19, %cst_7 [1] : vector<16x128xf32> to vector<16xf32>
    %21 = vector.shape_cast %20 : vector<16xf32> to vector<16x1xf32>
    %cst_8 = arith.constant 3.125000e-02 : f32
    %22 = vector.broadcast %cst_8 : f32 to vector<16x1xf32>
    %23 = arith.mulf %21, %22 : vector<16x1xf32>
    %cst_9 = arith.constant 9.99999974E-6 : f32
    %24 = vector.broadcast %cst_9 : f32 to vector<16x1xf32>
    %25 = arith.addf %23, %24 : vector<16x1xf32>
    %26 = math.rsqrt %25 : vector<16x1xf32>
    %27 = vector.broadcast %26 : vector<16x1xf32> to vector<16x128xf32>
    %28 = arith.mulf %17, %27 : vector<16x128xf32>
    %c0_10 = arith.constant 0 : index
    %c0_11 = arith.constant 0 : index
    %29 = vector.load %arg4[%c0_10, %c0_11] : memref<1x128xf32, #tpu.memory_space<vmem>>, vector<1x128xf32>
    %30 = vector.broadcast %29 : vector<1x128xf32> to vector<16x128xf32>
    %31 = arith.mulf %28, %30 : vector<16x128xf32>
    %c0_12 = arith.constant 0 : index
    %c0_13 = arith.constant 0 : index
    %32 = vector.load %arg5[%c0_12, %c0_13] : memref<1x128xf32, #tpu.memory_space<vmem>>, vector<1x128xf32>
    %33 = vector.broadcast %32 : vector<1x128xf32> to vector<16x128xf32>
    %34 = arith.addf %31, %33 : vector<16x128xf32>
    %cst_14 = arith.constant 0.000000e+00 : f32
    %35 = vector.broadcast %cst_14 : f32 to vector<16x128xf32>
    %36 = arith.maximumf %34, %35 : vector<16x128xf32>
    %c0_15 = arith.constant 0 : index
    %c0_16 = arith.constant 0 : index
    %37 = vector.load %arg6[%c0_15, %c0_16] : memref<16x128xf32, #tpu.memory_space<vmem>>, vector<16x128xf32>
    tpu.vector_store %arg6[%c0_15, %c0_16], %36 {strides = array<i32>} : memref<16x128xf32, #tpu.memory_space<vmem>>, vector<16x128xf32>,
    return
  }
  func.func @transform_0(%arg0: i32) -> (i32, i32) {
    %c0_i32 = arith.constant 0 : i32
    %c0_i32_0 = arith.constant 0 : i32
    return %arg0, %c0_i32 : i32, i32
  }
  func.func @transform_1(%arg0: i32) -> (i32, i32) {
    %c0_i32 = arith.constant 0 : i32
    %c0_i32_0 = arith.constant 0 : i32
    %c0_i32_1 = arith.constant 0 : i32
    return %c0_i32, %c0_i32_0 : i32, i32
  }
  func.func @transform_2(%arg0: i32) -> (i32, i32) {
    %c0_i32 = arith.constant 0 : i32
    %c0_i32_0 = arith.constant 0 : i32
    %c0_i32_1 = arith.constant 0 : i32
    return %c0_i32, %c0_i32_0 : i32, i32
  }
  func.func @transform_3(%arg0: i32) -> (i32, i32) {
    %c0_i32 = arith.constant 0 : i32
    %c0_i32_0 = arith.constant 0 : i32
    %c0_i32_1 = arith.constant 0 : i32
    return %c0_i32, %c0_i32_0 : i32, i32
  }
  func.func @transform_4(%arg0: i32) -> (i32, i32) {
    %c0_i32 = arith.constant 0 : i32
    %c0_i32_0 = arith.constant 0 : i32
    %c0_i32_1 = arith.constant 0 : i32
    return %c0_i32, %c0_i32_0 : i32, i32
  }
  func.func @transform_5(%arg0: i32) -> (i32, i32) {
    %c0_i32 = arith.constant 0 : i32
    %c0_i32_0 = arith.constant 0 : i32
    return %arg0, %c0_i32 : i32, i32
  }
}

</mosaic_0001>

<bundles_post_ra>
// kernel: tpu_custom_call.1
= control target key start
LH: loop header
LB: loop body
LE: loop exit
PB: predicated region body
PF: predicated region fallthrough
CT: control target
= control target key end

     0   :  { %10 = vsyncpa [#allocation3], 0  ;;  %s335_s0 = inlined_call_operand.hbm [shape: f32[16,16], index: 0, kind: input, shape index: {}]   ;;  %s336_s1 = inlined_call_operand.hbm [shape: f32[16,128], index: 1, kind: input, shape index: {}]   ;;  %s337_s2 = inlined_call_operand.vmem [shape: f32[1,128], index: 2, kind: input, shape index: {}]   ;;  %s338_s3 = inlined_call_operand.vmem [shape: f32[1,128], index: 3, kind: input, shape index: {}]   ;;  %s339_s4 = inlined_call_operand.vmem [shape: f32[1,128], index: 4, kind: input, shape index: {}]   ;;  %s340_s5 = inlined_call_operand.hbm [shape: f32[16,128], index: 5, kind: output, shape index: {}]  }
   0x1   :  { %11 = vsyncpa [#allocation6], 0 }
   0x2   :  { %12 = vsyncpa [#allocation4], 0  ;;  %s17_s20 = sshll.u32 %s335_s0, 4  ;;  %s272_s21 = smov [#allocation2]   ;;  %s18_s20 = int_to_ptr.hbm [resolvable:$true] %s17_s20 }
   0x3   :  { %s19_s22 = sshll.u32 %s272_s21, 4  ;;  %s30_s25 = sshll.u32 %s336_s1, 4  ;;  %s20_s22 = int_to_ptr.vmem [resolvable:$true] %s19_s22  ;;  %s31_s25 = int_to_ptr.hbm [resolvable:$true] %s30_s25 }
   0x4   :  { %s273_s26 = smov 128   ;;  %s274_s27 = smov 8  }
   0x5   :  { %25 = dma.hbm_to_vmem [thread:$0]  %s18_s20, 256, %s20_s22, [#allocation3], %s273_s26, %s273_s26, %s274_s27  }
   0x6   :  { %s275_s28 = smov [#allocation5]  }
   0x7   :  { %s32_s29 = sshll.u32 %s275_s28, 4  ;;  %s33_s29 = int_to_ptr.vmem [resolvable:$true] %s32_s29 }
   0x8   :  { %38 = dma.hbm_to_vmem [thread:$0]  %s31_s25, 256, %s33_s29, [#allocation6], %s273_s26, %s273_s26, %s274_s27  }
   0x9   :  { %266 = dma.done.wait [#allocation3], 256  }
   0xa   :  { %267 = vsyncadd [#allocation3], 4294967040 }
   0xb   :  { %268 = dma.done.wait [#allocation6], 256  }
   0xc   :  { %269 = vsyncadd [#allocation6], 4294967040  ;;  %v54_v0 = vld [vmem:[#allocation5 + $0x8] sm:$0xff]  ;;  %v53_v1 = vld [vmem:[#allocation5] sm:$0xff]  ;;  %vm61_vm0 = vcmask 130048   ;;  %v91_v4 = vlaneseq  ;;  %v276_v8 = vmov 0.0  }
   0xd   :  { %82 = vmatpush.msra.mxu0 %v54_v0  ;;  %v55_v2 = vld [vmem:[#allocation2] sm:$0xff]  ;;  %179 = vmatpush.msra.mxu1 %v54_v0  ;;  %v56_v3 = vld [vmem:[#allocation2 + $0x8] sm:$0xff]  ;;  %s162_s11 = sshll.u32 %s340_s5, 4  ;;  %s163_s11 = int_to_ptr.hbm [resolvable:$true] %s162_s11 }
   0xe   :  { %v92_v5 = vand.u32 127, %v91_v4  ;;  %v187_v6 = vld [vmem:[%s337_s2] ss:$0 sm:$0xff] }
   0xf   :  { %83 = vmatpush.msra.mxu0 %v53_v1  ;;  %180 = vmatpush.msra.mxu1 %v53_v1  ;;  %v188_v39 = vld [vmem:[%s338_s3] ss:$0 sm:$0xff]  ;;  %s277_s3 = smov [#allocation7]  }
  0x10   :  { %176 = vmatmul.msk.f32.vlgmr.msra.gmra.mxu0 %vm61_vm0, %v55_v2  ;;  %177 = vmatmul.msk.f32.vlgmr.msra.gmra.mxu1 %vm61_vm0, %v56_v3  ;;  %vm93_vm1 = vcmp.lt.s32.totalorder %v92_v5, 32  ;;  %v189_v43 = vld [vmem:[%s339_s4] ss:$0 sm:$0xff]  ;;  %s160_s8 = sshll.u32 %s277_s3, 4  ;;  %s161_s8 = int_to_ptr.vmem [resolvable:$true] %s160_s8 }
  0x11   :  { %v178_v9 = vsel %vm93_vm1, 1.0, %v276_v8 }
  0x8d   :  { %v85_v7 = vpop.f32.mrf.mxu0  ;;  %v88_v11 = vpop.f32.mrf.mxu1 }
  0x8e   :  { %v86_v10 = vadd.f32 %v187_v6, %v85_v7  ;;  %v89_v13 = vadd.f32 %v187_v6, %v88_v11 }
  0x90   :  { %v96_v12 = vmul.f32 %v178_v9, %v86_v10  ;;  %v97_v14 = vmul.f32 %v178_v9, %v89_v13 }
  0x92   :  { %98 = vadd.xlane.f32.xlu0 %v96_v12 }
  0x9a   :  { %100 = vadd.xlane.f32.xlu0 %v97_v14 }
 0x105   :  { %v99_v15 = vpop.xlane.xlu0 %98 }
 0x106   :  { %v102_v16 = vmul.f32 0.03125, %v99_v15 }
 0x108   :  { %v104_v17 = vsub.f32 %v86_v10, %v102_v16 }
 0x10a   :  { %v106_v18 = vmul.f32 %v104_v17, %v104_v17 }
 0x10c   :  { %v108_v19 = vmul.f32 %v178_v9, %v106_v18 }
 0x10d   :  { %v101_v20 = vpop.xlane.xlu0 %100 }
 0x10e   :  { %v103_v21 = vmul.f32 0.03125, %v101_v20  ;;  %110 = vadd.xlane.f32.xlu1 %v108_v19 }
 0x110   :  { %v105_v22 = vsub.f32 %v89_v13, %v103_v21 }
 0x112   :  { %v107_v23 = vmul.f32 %v105_v22, %v105_v22 }
 0x114   :  { %v109_v24 = vmul.f32 %v178_v9, %v107_v23 }
 0x116   :  { %112 = vadd.xlane.f32.xlu1 %v109_v24 }
 0x181   :  { %v111_v25 = vpop.xlane.xlu1 %110 }
 0x182   :  { %v114_v26 = vmul.f32 0.03125, %v111_v25 }
 0x184   :  { %v116_v27 = vadd.f32 1e-05, %v114_v26 }
 0x186   :  { %190 = vrsqrt.f32 %v116_v27  ;;  %vm124_vm3 = vweird.f32 %v116_v27 }
 0x189   :  { %v113_v28 = vpop.xlane.xlu1 %112 }
 0x18a   :  { %v115_v29 = vmul.f32 0.03125, %v113_v28 }
 0x18c   :  { %v191_v30 = vpop.eup %190  ;;  %v117_v31 = vadd.f32 1e-05, %v115_v29 }
 0x18d   :  { %v119_v32 = vmul.f32 %v191_v30, %v116_v27  ;;  %vm125_vm2 = vweird.f32 %v191_v30 }
 0x18e   :  { %192 = vrsqrt.f32 %v117_v31  ;;  %vm126_vm4 = vmor %vm124_vm3, %vm125_vm2  ;;  %vm134_vm6 = vweird.f32 %v117_v31 }
 0x18f   :  { %v120_v33 = vmul.f32 %v191_v30, %v119_v32 }
 0x191   :  { %v121_v34 = vmul.f32 0.5, %v120_v33 }
 0x193   :  { %v122_v35 = vsub.f32 1.5, %v121_v34 }
 0x194   :  { %v193_v36 = vpop.eup %192 }
 0x195   :  { %v123_v37 = vmul.f32 %v191_v30, %v122_v35  ;;  %v129_v38 = vmul.f32 %v193_v36, %v117_v31  ;;  %vm135_vm5 = vweird.f32 %v193_v36 }
 0x196   :  { %vm136_vm7 = vmor %vm134_vm6, %vm135_vm5 }
 0x197   :  { %v127_v40 = vsel %vm126_vm4, %v191_v30, %v123_v37  ;;  %v130_v41 = vmul.f32 %v193_v36, %v129_v38 }
 0x198   :  { %v138_v42 = vmul.f32 %v127_v40, %v104_v17 }
 0x199   :  { %v131_v44 = vmul.f32 0.5, %v130_v41 }
 0x19a   :  { %v144_v45 = vmul.f32 %v188_v39, %v138_v42 }
 0x19b   :  { %v132_v46 = vsub.f32 1.5, %v131_v44 }
 0x19c   :  { %v150_v47 = vadd.f32 %v189_v43, %v144_v45 }
 0x19d   :  { %v133_v48 = vmul.f32 %v193_v36, %v132_v46 }
 0x19e   :  { %v152_v49 = vmax.f32 %v150_v47, 0.0 }
 0x19f   :  { %v137_v50 = vsel %vm136_vm7, %v193_v36, %v133_v48 }
 0x1a0   :  { %v139_v51 = vmul.f32 %v137_v50, %v105_v22  ;;  %154 = vst [vmem:[#allocation7] sm:$0xff] %v152_v49 }
 0x1a2   :  { %v145_v52 = vmul.f32 %v188_v39, %v139_v51 }
 0x1a4   :  { %v151_v53 = vadd.f32 %v189_v43, %v145_v52 }
 0x1a6   :  { %v153_v54 = vmax.f32 %v151_v53, 0.0 }
 0x1a8   :  { %155 = vst [vmem:[#allocation7 + $0x8] sm:$0xff] %v153_v54 }
 0x1a9   :  { %168 = dma.vmem_to_hbm [thread:$0]  %s161_s8, 256, %s163_s11, [#allocation4], %s273_s26, %s273_s26, %s274_s27  }
 0x1aa   :  { %270 = dma.done.wait [#allocation4], 256  }
 0x1ab   :  { %271 = vsyncadd [#allocation4], 4294967040 }
 0x1ac   :  { %173 = vsyncpa [#allocation3], 1 }
 0x1ad   :  { %174 = vsyncpa [#allocation6], 1 }
 0x1ae   :  { %175 = vsyncpa [#allocation4], 1 }

</bundles_post_ra>
